<compile_context>
chip_gen: v6e
topology: v6e:2x2x1
jax: 0.10.0
libtpu: 0.0.40
codegen_flags: <defaults>
</compile_context>

<pallas_src>
import jax
import jax.numpy as jnp
from jax.experimental import pallas as pl
from jax.experimental.pallas import tpu as pltpu

C_IN = 3            # input channels (xyz)
C1, C2, C3 = 8, 16, 24
C_OUT = C_IN + C3   # 27


def _base_pointnet_kernel(x_ref, w1_ref, w2_ref, w3_ref,
                          b1_ref, b2_ref, b3_ref, out_ref):
    # x_ref: (3, TR) f32 — channels on sublanes, points on lanes.
    x = x_ref[...]

    # conv1 (1x1, BN-folded) + ReLU -> (8, TR).  Kept in f32 so the raw xyz
    # coordinates are not quantized (K=3 => negligible MXU cost).
    h = jnp.dot(w1_ref[...], x, preferred_element_type=jnp.float32)
    h = jnp.maximum(h + b1_ref[...], 0.0)

    # conv2 (1x1, BN-folded) + ReLU -> (16, TR); bf16 MXU, f32 accumulation.
    h = jnp.dot(w2_ref[...], h.astype(jnp.bfloat16),
                preferred_element_type=jnp.float32)
    h = jnp.maximum(h + b2_ref[...], 0.0)

    # conv3 widened to 27 output rows (rows 0..2 zero) + ReLU -> (27, TR).
    f = jnp.dot(w3_ref[...], h.astype(jnp.bfloat16),
                preferred_element_type=jnp.float32)
    f = jnp.maximum(f + b3_ref[...], 0.0)

    # Lane-dense full-block store of the features, then the xyz passthrough is
    # a small sublane-masked store over the (zero) first 3 rows.  Pure VPU /
    # store work — no identity-embed matmul.
    out_ref[...] = f
    out_ref[0:C_IN, :] = x


def base_pointnet_forward(x, params, row_tile=32768):
    """x: (B, N, 3) float32. Returns (B, N, 27) float32 matching
    BasePointNet.forward with eval-mode BatchNorm."""
    B, N, cin = x.shape
    assert cin == C_IN
    w1, b1, w2, b2, w3, b3 = params     # w: (Cin, Cout); BN already folded

    rows = B * N
    # Channels-first (3, rows).  In a real pipeline hand this layout over
    # directly instead of transposing here.
    xT = x.reshape(rows, C_IN).astype(jnp.float32).T

    # Lane tile: multiple of 128, capped at row_tile.
    lanes = -(-rows // 128) * 128
    tr = min(max(128, (row_tile // 128) * 128), lanes)
    # v7x has two TensorCores; the "parallel" axis only shards with >= 2 steps.
    if lanes >= 256:
        tr = min(tr, -(-(lanes // 2) // 128) * 128)
    rows_pad = -(-lanes // tr) * tr
    if rows_pad != rows:
        xT = jnp.pad(xT, ((0, 0), (0, rows_pad - rows)))

    # Transposed (channels-first) weights; conv3 widened to 27 rows (rows 0..2
    # zero) so the kernel output needs no sublane concatenate.
    w1T = w1.astype(jnp.float32).T                                   # (8, 3)  f32
    w2T = w2.astype(jnp.bfloat16).T                                  # (16, 8) bf16
    w3T = jnp.pad(w3, ((0, 0), (C_IN, 0))).astype(jnp.bfloat16).T    # (27, 16) bf16
    b1c = b1.astype(jnp.float32).reshape(C1, 1)
    b2c = b2.astype(jnp.float32).reshape(C2, 1)
    b3c = jnp.pad(b3.astype(jnp.float32), (C_IN, 0)).reshape(C_OUT, 1)

    grid = (rows_pad // tr,)
    const = lambda i: (0, 0)

    outT = pl.pallas_call(
        _base_pointnet_kernel,
        out_shape=jax.ShapeDtypeStruct((C_OUT, rows_pad), jnp.float32),
        grid_spec=pltpu.PrefetchScalarGridSpec(
            num_scalar_prefetch=0,
            grid=grid,
            in_specs=[
                pl.BlockSpec((C_IN, tr), lambda i: (0, i)),   # x, channels-first
                pl.BlockSpec((C1, C_IN), const),              # w1^T (f32)
                pl.BlockSpec((C2, C1), const),                # w2^T (bf16)
                pl.BlockSpec((C_OUT, C2), const),             # w3^T widened (bf16)
                pl.BlockSpec((C1, 1), const),                 # b1
                pl.BlockSpec((C2, 1), const),                 # b2
                pl.BlockSpec((C_OUT, 1), const),              # b3 widened
            ],
            out_specs=pl.BlockSpec((C_OUT, tr), lambda i: (0, i)),
        ),
        compiler_params=pltpu.CompilerParams(
            dimension_semantics=("parallel",),
            vmem_limit_bytes=32 * 1024 * 1024),
    )(xT, w1T, w2T, w3T, b1c, b2c, b3c)

    return outT[:, :rows].T.reshape(B, N, C_OUT)


def _fold_bn(w, b, gamma, beta, mean, var, eps=1e-5):
    """Fold eval-mode BatchNorm1d into a 1x1 conv. w: (Cin, Cout), b: (Cout,)."""
    scale = gamma / jnp.sqrt(var + eps)
    return w * scale[None, :], (b - mean) * scale + beta


def make_params(key):
    """Deterministic synthetic parameters matching BasePointNet.__init__ shapes
    (conv weights stored as (Cin, Cout), the transpose of PyTorch's
    (Cout, Cin, 1)), with eval-mode BatchNorm folded into each conv."""
    dims = [(C_IN, C1), (C1, C2), (C2, C3)]
    params = []
    for layer, (cin, cout) in enumerate(dims):
        ks = jax.random.split(jax.random.fold_in(key, layer), 6)
        w = 0.1 * jax.random.normal(ks[0], (cin, cout), jnp.float32)
        b = 0.1 * jax.random.normal(ks[1], (cout,), jnp.float32)
        gamma = 1.0 + 0.05 * jax.random.normal(ks[2], (cout,), jnp.float32)
        beta = 0.05 * jax.random.normal(ks[3], (cout,), jnp.float32)
        mean = 0.05 * jax.random.normal(ks[4], (cout,), jnp.float32)
        var = 1.0 + 0.1 * jax.random.uniform(ks[5], (cout,), jnp.float32)
        w_eff, b_eff = _fold_bn(w, b, gamma, beta, mean, var)
        params += [w_eff.astype(jnp.float32), b_eff.astype(jnp.float32)]
    return tuple(params)


if __name__ == "__main__":
    key = jax.random.PRNGKey(0)
    kx, kp = jax.random.split(key)

    B, N = 2, 64                       # channels fixed at 3 by the module
    x = jax.random.normal(kx, (B, N, C_IN), jnp.float32)
    params = make_params(kp)

    out = base_pointnet_forward(x, params)
    jax.block_until_ready(out)
    assert out.shape == (B, N, C_OUT)

    # Plain-JAX reference (same eval-mode BN folding); loose tolerance for the
    # bf16 matmul path (conv2/conv3) inside the kernel.
    w1, b1, w2, b2, w3, b3 = params
    h = jnp.maximum(x @ w1 + b1, 0.0)
    h = jnp.maximum(h @ w2 + b2, 0.0)
    h = jnp.maximum(h @ w3 + b3, 0.0)
    ref = jnp.concatenate([x, h], axis=-1)
    assert jnp.allclose(out, ref, atol=5e-2, rtol=5e-2)
    print("KERNEL_OK")
</pallas_src>

<mosaic_0001>
module attributes {stable_mosaic.version = 11 : i64} {
  func.func @_base_pointnet_kernel(%arg0: i32, %arg1: memref<3x128xf32, #tpu.memory_space<vmem>>, %arg2: memref<8x3xf32, #tpu.memory_space<vmem>>, %arg3: memref<16x8xbf16, #tpu.memory_space<vmem>>, %arg4: memref<27x16xbf16, #tpu.memory_space<vmem>>, %arg5: memref<8x1xf32, #tpu.memory_space<vmem>>, %arg6: memref<16x1xf32, #tpu.memory_space<vmem>>, %arg7: memref<27x1xf32, #tpu.memory_space<vmem>>, %arg8: memref<27x128xf32, #tpu.memory_space<vmem>>) attributes {dimension_semantics = [#tpu.dimension_semantics<parallel>], iteration_bounds = array<i64: 1>, scalar_prefetch = 0 : i64, scratch_operands = 0 : i64, tpu.core_type = #tpu.core_type<tc>, window_params = [{transform_indices = @transform_0, window_bounds = array<i64: 3, 128>}, {pipeline_mode = #tpu.pipeline_mode<synchronous>, transform_indices = @transform_1, window_bounds = array<i64: 8, 3>}, {pipeline_mode = #tpu.pipeline_mode<synchronous>, transform_indices = @transform_2, window_bounds = array<i64: 16, 8>}, {pipeline_mode = #tpu.pipeline_mode<synchronous>, transform_indices = @transform_3, window_bounds = array<i64: 27, 16>}, {pipeline_mode = #tpu.pipeline_mode<synchronous>, transform_indices = @transform_4, window_bounds = array<i64: 8, 1>}, {pipeline_mode = #tpu.pipeline_mode<synchronous>, transform_indices = @transform_5, window_bounds = array<i64: 16, 1>}, {pipeline_mode = #tpu.pipeline_mode<synchronous>, transform_indices = @transform_6, window_bounds = array<i64: 27, 1>}, {transform_indices = @transform_7, window_bounds = array<i64: 27, 128>}]} {
    %c0 = arith.constant 0 : index
    %c0_0 = arith.constant 0 : index
    %0 = vector.load %arg1[%c0, %c0_0] : memref<3x128xf32, #tpu.memory_space<vmem>>, vector<3x128xf32>
    %c0_1 = arith.constant 0 : index
    %c0_2 = arith.constant 0 : index
    %1 = vector.load %arg2[%c0_1, %c0_2] : memref<8x3xf32, #tpu.memory_space<vmem>>, vector<8x3xf32>
    %cst = arith.constant dense<0.000000e+00> : vector<8x128xf32>
    %2 = tpu.matmul %1, %0, %cst {dimension_numbers = #tpu.dot_dimension_numbers<[1], [0], [0], [1], [0, 0, 1, 1], [], []>} : vector<8x3xf32>, vector<3x128xf32>, vector<8x128xf32> -> vector<8x128xf32>
    %c0_3 = arith.constant 0 : index
    %c0_4 = arith.constant 0 : index
    %3 = vector.load %arg5[%c0_3, %c0_4] : memref<8x1xf32, #tpu.memory_space<vmem>>, vector<8x1xf32>
    %4 = vector.broadcast %3 : vector<8x1xf32> to vector<8x128xf32>
    %5 = arith.addf %2, %4 : vector<8x128xf32>
    %cst_5 = arith.constant 0.000000e+00 : f32
    %6 = vector.broadcast %cst_5 : f32 to vector<8x128xf32>
    %7 = arith.maximumf %5, %6 : vector<8x128xf32>
    %c0_6 = arith.constant 0 : index
    %c0_7 = arith.constant 0 : index
    %8 = vector.load %arg3[%c0_6, %c0_7] : memref<16x8xbf16, #tpu.memory_space<vmem>>, vector<16x8xbf16>
    %9 = arith.truncf %7 : vector<8x128xf32> to vector<8x128xbf16>
    %cst_8 = arith.constant dense<0.000000e+00> : vector<16x128xf32>
    %10 = tpu.matmul %8, %9, %cst_8 {dimension_numbers = #tpu.dot_dimension_numbers<[1], [0], [0], [1], [0, 0, 1, 1], [], []>} : vector<16x8xbf16>, vector<8x128xbf16>, vector<16x128xf32> -> vector<16x128xf32>
    %c0_9 = arith.constant 0 : index
    %c0_10 = arith.constant 0 : index
    %11 = vector.load %arg6[%c0_9, %c0_10] : memref<16x1xf32, #tpu.memory_space<vmem>>, vector<16x1xf32>
    %12 = vector.broadcast %11 : vector<16x1xf32> to vector<16x128xf32>
    %13 = arith.addf %10, %12 : vector<16x128xf32>
    %cst_11 = arith.constant 0.000000e+00 : f32
    %14 = vector.broadcast %cst_11 : f32 to vector<16x128xf32>
    %15 = arith.maximumf %13, %14 : vector<16x128xf32>
    %c0_12 = arith.constant 0 : index
    %c0_13 = arith.constant 0 : index
    %16 = vector.load %arg4[%c0_12, %c0_13] : memref<27x16xbf16, #tpu.memory_space<vmem>>, vector<27x16xbf16>
    %17 = arith.truncf %15 : vector<16x128xf32> to vector<16x128xbf16>
    %cst_14 = arith.constant dense<0.000000e+00> : vector<27x128xf32>
    %18 = tpu.matmul %16, %17, %cst_14 {dimension_numbers = #tpu.dot_dimension_numbers<[1], [0], [0], [1], [0, 0, 1, 1], [], []>} : vector<27x16xbf16>, vector<16x128xbf16>, vector<27x128xf32> -> vector<27x128xf32>
    %c0_15 = arith.constant 0 : index
    %c0_16 = arith.constant 0 : index
    %19 = vector.load %arg7[%c0_15, %c0_16] : memref<27x1xf32, #tpu.memory_space<vmem>>, vector<27x1xf32>
    %20 = vector.broadcast %19 : vector<27x1xf32> to vector<27x128xf32>
    %21 = arith.addf %18, %20 : vector<27x128xf32>
    %cst_17 = arith.constant 0.000000e+00 : f32
    %22 = vector.broadcast %cst_17 : f32 to vector<27x128xf32>
    %23 = arith.maximumf %21, %22 : vector<27x128xf32>
    %c0_18 = arith.constant 0 : index
    %c0_19 = arith.constant 0 : index
    %24 = vector.load %arg8[%c0_18, %c0_19] : memref<27x128xf32, #tpu.memory_space<vmem>>, vector<27x128xf32>
    tpu.vector_store %arg8[%c0_18, %c0_19], %23 {strides = array<i32>} : memref<27x128xf32, #tpu.memory_space<vmem>>, vector<27x128xf32>,
    %c0_20 = arith.constant 0 : index
    %c0_21 = arith.constant 0 : index
    %25 = vector.load %arg8[%c0_20, %c0_21] : memref<27x128xf32, #tpu.memory_space<vmem>>, vector<3x128xf32>
    tpu.vector_store %arg8[%c0_20, %c0_21], %0 {strides = array<i32>} : memref<27x128xf32, #tpu.memory_space<vmem>>, vector<3x128xf32>,
    return
  }
  func.func @transform_0(%arg0: i32) -> (i32, i32) {
    %c0_i32 = arith.constant 0 : i32
    %c0_i32_0 = arith.constant 0 : i32
    return %c0_i32, %arg0 : i32, i32
  }
  func.func @transform_1(%arg0: i32) -> (i32, i32) {
    %c0_i32 = arith.constant 0 : i32
    %c0_i32_0 = arith.constant 0 : i32
    %c0_i32_1 = arith.constant 0 : i32
    return %c0_i32, %c0_i32_0 : i32, i32
  }
  func.func @transform_2(%arg0: i32) -> (i32, i32) {
    %c0_i32 = arith.constant 0 : i32
    %c0_i32_0 = arith.constant 0 : i32
    %c0_i32_1 = arith.constant 0 : i32
    return %c0_i32, %c0_i32_0 : i32, i32
  }
  func.func @transform_3(%arg0: i32) -> (i32, i32) {
    %c0_i32 = arith.constant 0 : i32
    %c0_i32_0 = arith.constant 0 : i32
    %c0_i32_1 = arith.constant 0 : i32
    return %c0_i32, %c0_i32_0 : i32, i32
  }
  func.func @transform_4(%arg0: i32) -> (i32, i32) {
    %c0_i32 = arith.constant 0 : i32
    %c0_i32_0 = arith.constant 0 : i32
    %c0_i32_1 = arith.constant 0 : i32
    return %c0_i32, %c0_i32_0 : i32, i32
  }
  func.func @transform_5(%arg0: i32) -> (i32, i32) {
    %c0_i32 = arith.constant 0 : i32
    %c0_i32_0 = arith.constant 0 : i32
    %c0_i32_1 = arith.constant 0 : i32
    return %c0_i32, %c0_i32_0 : i32, i32
  }
  func.func @transform_6(%arg0: i32) -> (i32, i32) {
    %c0_i32 = arith.constant 0 : i32
    %c0_i32_0 = arith.constant 0 : i32
    %c0_i32_1 = arith.constant 0 : i32
    return %c0_i32, %c0_i32_0 : i32, i32
  }
  func.func @transform_7(%arg0: i32) -> (i32, i32) {
    %c0_i32 = arith.constant 0 : i32
    %c0_i32_0 = arith.constant 0 : i32
    return %c0_i32, %arg0 : i32, i32
  }
}

</mosaic_0001>

<bundles_post_ra>
// kernel: tpu_custom_call.1
= control target key start
LH: loop header
LB: loop body
LE: loop exit
PB: predicated region body
PF: predicated region fallthrough
CT: control target
= control target key end

     0   :  { %vm40_vm0 = vcmask 1042432   ;;  %v371_v2 = vmov 0.0   ;;  %vm372_vm1 = vmmov 0   ;;  %vm36_vm2 = vcmask 23552   ;;  %s462_s0 = inlined_call_operand.vmem [shape: f32[3,128], index: 0, kind: input, shape index: {}]   ;;  %s463_s1 = inlined_call_operand.vmem [shape: f32[8,3], index: 1, kind: input, shape index: {}]   ;;  %s464_s2 = inlined_call_operand.vmem [shape: bf16[16,8], index: 2, kind: input, shape index: {}]   ;;  %s465_s3 = inlined_call_operand.vmem [shape: bf16[27,16], index: 3, kind: input, shape index: {}]   ;;  %s466_s4 = inlined_call_operand.vmem [shape: f32[8,1], index: 4, kind: input, shape index: {}]   ;;  %s467_s5 = inlined_call_operand.vmem [shape: f32[16,1], index: 5, kind: input, shape index: {}]   ;;  %s468_s6 = inlined_call_operand.vmem [shape: f32[27,1], index: 6, kind: input, shape index: {}]   ;;  %s469_s7 = inlined_call_operand.hbm [shape: f32[27,128], index: 7, kind: output, shape index: {}]  }
   0x1   :  { %v420_v0 = vld [vmem:[%s462_s0] sm:$0x7]  ;;  %321 = vmatprep.subr.mxu0 %v371_v2  ;;  %323 = vmatprep.mubr.msk.f32.mxu0 %vm372_vm1, %v371_v2  ;;  %v373_v4 = vmov 0  }
   0x2   :  { %v29_v1 = vld [vmem:[%s463_s1] sm:$0xff]  ;;  %322 = vmatpush3.msk.msra.mxu0 %vm40_vm0, %v420_v0  ;;  %344 = vset.pattern.permute.xlu0 %v373_v4 }
   0x3   :  { %v30_v3 = vld [vmem:[%s466_s4] sm:$0xff]  ;;  %324 = vmatmul.mubr.msk.f32.vlgmr.msra.gmra.mxu0 %vm36_vm2, %v29_v1  ;;  %326 = vmatprep.subr.bf16.mxu1 %v371_v2 }
   0x4   :  { %33 = vperm.xlu0 %344, %v30_v3   ;;  %v118_v5 = vld [vmem:[%s467_s5] sm:$0xff]  ;;  %328 = vmatprep.mubr.msk.bf16.mxu1 %vm372_vm1, %v371_v2 }
   0x5   :  { %12 = vsyncpa [#allocation3], 0  ;;  %345 = vset.pattern.permute.xlu1 %v373_v4  ;;  %v192_v6 = vld [vmem:[%s468_s6 + $0x8] sm:$0xff]  ;;  %v194_v7 = vld [vmem:[%s468_s6 + $0x18] sm:$0x7]  ;;  %vm139_vm3 = vcmask 1043456  }
   0x6   :  { %v119_v8 = vld [vmem:[%s467_s5 + $0x8] sm:$0xff]  ;;  %v191_v9 = vld [vmem:[%s468_s6] sm:$0xff]  ;;  %v193_v10 = vld [vmem:[%s468_s6 + $0x10] sm:$0xff]  ;;  %vm135_vm4 = vcmask 64512   ;;  %vm225_vm5 = vcmask 130048   ;;  %s374_s19 = smov [#allocation2]  }
   0x7   :  { %127 = vperm.xlu1 %345, %v119_v8   ;;  %v346_v18 = vld [vmem:[%s464_s2] sm:$0xff]   ;;  %v348_v31 = vld [vmem:[%s465_s3 + $0x8] sm:$0x3f]   ;;  %s295_s20 = sshll.u32 %s374_s19, 4  ;;  %s296_s20 = int_to_ptr.vmem [resolvable:$true] %s295_s20 }
   0x8   :  { %122 = vperm.xlu0 %344, %v118_v5   ;;  %v347_v19 = vld [vmem:[%s465_s3] sm:$0xff]   ;;  %s349_s3 = scalar_lea.vmem %s296_s20, 512  ;;  %p354_p1 = scmp.lt.s32.totalorder %s296_s20, %s296_s20 }
   0x9   :  { %334 = vmatprep.mubr.msk.bf16.mxu0 %vm225_vm5, %v347_v19  ;;  %p350_p0 = scmp.ne.s32.totalorder %s296_s20, %s349_s3  ;;  %p355_p2 = scmp.lt.s32.totalorder %s349_s3, %s349_s3 }
   0xb   :  { %197 = vperm.xlu1 %345, %v191_v9   ;;  %p356_p3 = por %p355_p2, %p354_p1 }
   0xc   :  { %202 = vperm.xlu0 %344, %v192_v6  }
   0xd   :  { %p357_p4 = pnand %p356_p3, %p350_p0 }
   0xf   :  { %207 = vperm.xlu1 %345, %v193_v10  }
  0x10   :  { %212 = vperm.xlu0 %344, %v194_v7  }
  0x7f   :  { %v34_v11 = vpop.permute.xlu0 %33 }
  0x82   :  { %v128_v24 = vpop.permute.xlu1 %127 }
  0x83   :  { %v123_v21 = vpop.permute.xlu0 %122 }
  0x86   :  { %v198_v32 = vpop.permute.xlu1 %197 }
  0x87   :  { %v203_v33 = vpop.permute.xlu0 %202 }
  0x8a   :  { %v208_v34 = vpop.permute.xlu1 %207 }
  0x8b   :  { %v213_v40 = vpop.permute.xlu0 %212 }
  0xc3   :  { %v110_v12 = vpop.f32.mrf.mxu0 }
  0xc4   :  { %v111_v13 = vadd.f32 %v110_v12, %v34_v11 }
  0xc5   :  { %v325_v14 = vpop.f32.mrf.mxu0 }
  0xc6   :  { %v114_v15 = vmax.f32 %v111_v13, 0.0 }
  0xc8   :  { %v117_v16 = vpack.c.bf16 %v114_v15, %v114_v15 }
  0xca   :  { %v141_v17 = vsel %vm139_vm3, %v117_v16, 0 }
  0xcb   :  { %327 = vmatpush3.bf16.msra.mxu1 %v141_v17 }
  0xce   :  { %329 = vmatmul.mubr.msk.bf16.vlgmr.msra.gmra.mxu1 %vm135_vm4, %v346_v18 }
 0x18e   :  { %v177_v20 = vpop.f32.mrf.mxu1 }
 0x18f   :  { %v178_v23 = vadd.f32 %v177_v20, %v123_v21 }
 0x190   :  { %v330_v22 = vpop.f32.mrf.mxu1 }
 0x191   :  { %v184_v28 = vmax.f32 %v178_v23, 0.0 }
 0x192   :  { %v180_v25 = vpop.f32.mrf.mxu1 }
 0x193   :  { %v181_v26 = vadd.f32 %v180_v25, %v128_v24 }
 0x194   :  { %v331_v27 = vpop.f32.mrf.mxu1 }
 0x195   :  { %v185_v29 = vmax.f32 %v181_v26, 0.0 }
 0x197   :  { %v190_v30 = vpack.c.bf16 %v185_v29, %v184_v28 }
 0x199   :  { %332 = vmatprep.subr.bf16.mxu0 %v190_v30 }
 0x19a   :  { %333 = vmatpush3.bf16.msra.mxu0 %v190_v30 }
 0x19d   :  { %335 = vmatmul.mubr.msk.bf16.vlgmr.msra.gmra.mxu0 %vm225_vm5, %v348_v31 }
 0x25d   :  { %v336_v35 = vpop.f32.mrf.mxu0 }
 0x25e   :  { %v275_v36 = vadd.f32 %v336_v35, %v208_v34 }
 0x25f   :  { %v266_v37 = vpop.f32.mrf.mxu0 }
 0x260   :  { %v283_v38 = vmax.f32 %v275_v36, 0.0  ;;  %v267_v39 = vadd.f32 %v266_v37, %v198_v32 }
 0x261   :  { %v337_v41 = vpop.f32.mrf.mxu0 }
 0x262   :  { %287 = vst [vmem:[#allocation2 + $0x10] sm:$0xff] %v283_v38  ;;  %v281_v42 = vmax.f32 %v267_v39, 0.0  ;;  %v278_v43 = vadd.f32 %v337_v41, %v213_v40 }
 0x263   :  { %v269_v44 = vpop.f32.mrf.mxu0 }
 0x264   :  { %285 = vst [vmem:[#allocation2] sm:$0xff] %v281_v42  ;;  %v284_v45 = vmax.f32 %v278_v43, 0.0  ;;  %v270_v46 = vadd.f32 %v269_v44, %v203_v33 }
 0x265   :  { %289 = vst [vmem:[#allocation2] sm:$0x7] %v420_v0 }
 0x266   :  { %288 = vst [vmem:[#allocation2 + $0x18] sm:$0x7] %v284_v45  ;;  %v282_v47 = vmax.f32 %v270_v46, 0.0 }
 0x268   :  { %286 = vst [vmem:[#allocation2 + $0x8] sm:$0xff] %v282_v47 }
 0x269   :  { %360 = shalt.err (!%p357_p4)
}
 0x26a   :  { %s375_s21 = smov 128   ;;  %s376_s22 = smov 8  }
 0x26b   :  { %301 = dma.vmem_to_hbm [thread:$0]  %s296_s20, 512, %s469_s7, [#allocation3], %s375_s21, %s375_s21, %s376_s22  }
 0x26c   :  { %369 = dma.done.wait [#allocation3], 512  }
 0x26d   :  { %370 = vsyncadd [#allocation3], 4294966784 }
 0x26e   :  { %305 = vsyncpa [#allocation3], 1 }

</bundles_post_ra>
